<compile_context>
chip_gen: v6e
topology: v6e:2x2x1
jax: 0.10.0
libtpu: 0.0.40
codegen_flags: <defaults>
</compile_context>

<pallas_src>
import math
import functools

import jax
import jax.numpy as jnp
from jax.experimental import pallas as pl
from jax.experimental.pallas import tpu as pltpu


def _attn_kernel(x_ref, wqkv_ref, bqkv_ref, wp_ref, bp_ref, o_ref, *, n_head):
    """One grid step = one batch element: fused QKV + head-batched attention + proj."""
    T, C = x_ref.shape
    hd = C // n_head
    scale = 1.0 / math.sqrt(hd)

    # Fused QKV projection: ONE wide MXU matmul (N = 3C), bf16 operands, f32 accumulate.
    x = x_ref[...].astype(jnp.bfloat16)
    qkv = jnp.dot(x, wqkv_ref[...],
                  preferred_element_type=jnp.float32) + bqkv_ref[0]      # (T, 3C) f32

    # Contiguous (T, C) slabs at offsets 0 / C / 2C — NOT 3*H narrow per-head slices.
    # Fold the attention scale into q here (T*C multiplies instead of H*T*T later).
    q = qkv[:, :C] * scale
    k = qkv[:, C:2 * C]
    v = qkv[:, 2 * C:]

    # Head-major (H, T, hd) views: one minor-dim split + one leading transpose per
    # tensor, feeding leading-batch MXU contractions below.
    def to_heads(z):
        return jnp.transpose(z.reshape(T, n_head, hd), (1, 0, 2)).astype(jnp.bfloat16)

    qh = to_heads(q)                # (H, T, hd) bf16
    kh = to_heads(k)                # (H, T, hd) bf16
    vh = to_heads(v)                # (H, T, hd) bf16

    # Attention scores for all heads in one batched matmul.
    att = jnp.einsum('htd,hsd->hts', qh, kh,
                     preferred_element_type=jnp.float32)                 # (H, T, T) f32

    # The module's registered mask buffer is all ones => masked_fill is a no-op; skip
    # the (T, T) mask DMA and compares entirely.

    # Numerically stable softmax over keys, kept in f32; reciprocal goes to the EUP.
    att = att - jnp.max(att, axis=-1, keepdims=True)
    att = jnp.exp(att)
    att = att * pl.reciprocal(jnp.sum(att, axis=-1, keepdims=True), approx=True)
    # TODO(synk): attn_drop / resid_drop are identity in eval mode (no dropout applied).

    # P @ V, batched over heads (bf16 operands, f32 accumulation).
    y = jnp.einsum('hts,hsd->htd', att.astype(jnp.bfloat16), vh,
                   preferred_element_type=jnp.float32)                   # (H, T, hd) f32

    # Fold heads back + output projection as ONE K=C matmul: (T, C) @ (C, C).
    y_flat = jnp.transpose(y, (1, 0, 2)).reshape(T, C).astype(jnp.bfloat16)
    out = jnp.dot(y_flat, wp_ref[...],
                  preferred_element_type=jnp.float32) + bp_ref[0]        # (T, C) f32
    o_ref[...] = out.astype(o_ref.dtype)


def causal_self_attention(x, params, n_head):
    """x: (B, T, C) float32.  params: dict of pre-transposed ([in, out]) f32 weights."""
    B, T, C = x.shape

    # Parameter plumbing (done once at init in a real model):
    #   * fuse Wq|Wk|Wv -> (C, 3C) bf16 and the biases -> (1, 3C) f32
    #   * projection weight stays (C, C) bf16 so heads fold back via a single matmul
    w_qkv = jnp.concatenate([params['wq'], params['wk'], params['wv']],
                            axis=1).astype(jnp.bfloat16)
    b_qkv = jnp.concatenate([params['bq'], params['bk'], params['bv']],
                            axis=1).astype(jnp.float32)
    w_proj = params['wp'].astype(jnp.bfloat16)
    b_proj = params['bp'].astype(jnp.float32)

    x_spec = pl.BlockSpec((pl.Squeezed(), T, C), lambda b: (b, 0, 0))
    kernel = functools.partial(_attn_kernel, n_head=n_head)

    return pl.pallas_call(
        kernel,
        out_shape=jax.ShapeDtypeStruct((B, T, C), x.dtype),
        grid_spec=pltpu.PrefetchScalarGridSpec(
            num_scalar_prefetch=0,
            grid=(B,),
            in_specs=[
                x_spec,
                pl.BlockSpec((C, 3 * C), lambda b: (0, 0)),   # fused QKV weight (bf16)
                pl.BlockSpec((1, 3 * C), lambda b: (0, 0)),   # fused QKV bias   (f32)
                pl.BlockSpec((C, C), lambda b: (0, 0)),       # proj weight      (bf16)
                pl.BlockSpec((1, C), lambda b: (0, 0)),       # proj bias        (f32)
            ],
            out_specs=x_spec,
        ),
        compiler_params=pltpu.CompilerParams(
            dimension_semantics=("parallel",)),               # even B -> both v7x TCs
    )(x, w_qkv, b_qkv, w_proj, b_proj)


def _reference(x, params, n_head):
    """Pure-JAX f32 reference mirroring the PyTorch forward (eval mode)."""
    B, T, C = x.shape
    hd = C // n_head

    def lin(z, w, b):
        return z @ w + b[0]

    q = lin(x, params['wq'], params['bq']).reshape(B, T, n_head, hd).transpose(0, 2, 1, 3)
    k = lin(x, params['wk'], params['bk']).reshape(B, T, n_head, hd).transpose(0, 2, 1, 3)
    v = lin(x, params['wv'], params['bv']).reshape(B, T, n_head, hd).transpose(0, 2, 1, 3)

    att = jnp.einsum('bhtd,bhsd->bhts', q, k) * (1.0 / math.sqrt(hd))
    mask = jnp.ones((T, T), jnp.float32)      # module registers an all-ones mask buffer
    att = jnp.where(mask[None, None] == 0, -jnp.inf, att)
    att = jax.nn.softmax(att, axis=-1)
    y = jnp.einsum('bhts,bhsd->bhtd', att, v)
    y = y.transpose(0, 2, 1, 3).reshape(B, T, C)
    return lin(y, params['wp'], params['bp'])


if __name__ == "__main__":
    # Small config consistent with the module: n_embd=32, n_head=4, block_size=8
    B, T, C, n_head = 2, 8, 32, 4

    key = jax.random.PRNGKey(0)
    ks = jax.random.split(key, 9)

    def make_linear(kw, kb):
        # weight stored as (in, out) = transposed nn.Linear weight
        w = jax.random.normal(kw, (C, C), jnp.float32) * 0.02
        b = jax.random.normal(kb, (1, C), jnp.float32) * 0.02
        return w, b

    wq, bq = make_linear(ks[0], ks[1])
    wk, bk = make_linear(ks[2], ks[3])
    wv, bv = make_linear(ks[4], ks[5])
    wp, bp = make_linear(ks[6], ks[7])

    params = dict(wq=wq, bq=bq, wk=wk, bk=bk, wv=wv, bv=bv, wp=wp, bp=bp)

    x = jax.random.normal(ks[8], (B, T, C), jnp.float32)

    out = causal_self_attention(x, params, n_head)
    out = jax.block_until_ready(out)

    ref = _reference(x, params, n_head)
    assert out.shape == (B, T, C)
    # Tolerance accounts for bf16 MXU operands and the EUP approximate reciprocal.
    assert jnp.allclose(out, ref, atol=2e-3, rtol=2e-3), "mismatch vs reference"

    print("KERNEL_OK")
</pallas_src>

<mosaic_0001>
module attributes {stable_mosaic.version = 11 : i64} {
  func.func @_attn_kernel(%arg0: i32, %arg1: memref<1x8x32xf32, #tpu.memory_space<vmem>>, %arg2: memref<32x96xbf16, #tpu.memory_space<vmem>>, %arg3: memref<1x96xf32, #tpu.memory_space<vmem>>, %arg4: memref<32x32xbf16, #tpu.memory_space<vmem>>, %arg5: memref<1x32xf32, #tpu.memory_space<vmem>>, %arg6: memref<1x8x32xf32, #tpu.memory_space<vmem>>) attributes {dimension_semantics = [#tpu.dimension_semantics<parallel>], iteration_bounds = array<i64: 2>, scalar_prefetch = 0 : i64, scratch_operands = 0 : i64, tpu.core_type = #tpu.core_type<tc>, window_params = [{transform_indices = @transform_0, window_bounds = array<i64: 1, 8, 32>}, {pipeline_mode = #tpu.pipeline_mode<synchronous>, transform_indices = @transform_1, window_bounds = array<i64: 32, 96>}, {pipeline_mode = #tpu.pipeline_mode<synchronous>, transform_indices = @transform_2, window_bounds = array<i64: 1, 96>}, {pipeline_mode = #tpu.pipeline_mode<synchronous>, transform_indices = @transform_3, window_bounds = array<i64: 32, 32>}, {pipeline_mode = #tpu.pipeline_mode<synchronous>, transform_indices = @transform_4, window_bounds = array<i64: 1, 32>}, {transform_indices = @transform_5, window_bounds = array<i64: 1, 8, 32>}]} {
    %c0 = arith.constant 0 : index
    %c0_0 = arith.constant 0 : index
    %c0_1 = arith.constant 0 : index
    %0 = vector.load %arg1[%c0, %c0_0, %c0_1] : memref<1x8x32xf32, #tpu.memory_space<vmem>>, vector<1x8x32xf32>
    %1 = vector.shape_cast %0 : vector<1x8x32xf32> to vector<8x32xf32>
    %2 = arith.truncf %1 : vector<8x32xf32> to vector<8x32xbf16>
    %c0_2 = arith.constant 0 : index
    %c0_3 = arith.constant 0 : index
    %3 = vector.load %arg2[%c0_2, %c0_3] : memref<32x96xbf16, #tpu.memory_space<vmem>>, vector<32x96xbf16>
    %cst = arith.constant dense<0.000000e+00> : vector<8x96xf32>
    %4 = tpu.matmul %2, %3, %cst {dimension_numbers = #tpu.dot_dimension_numbers<[1], [0], [0], [1], [0, 0, 1, 1], [], []>} : vector<8x32xbf16>, vector<32x96xbf16>, vector<8x96xf32> -> vector<8x96xf32>
    %c0_4 = arith.constant 0 : index
    %c0_5 = arith.constant 0 : index
    %5 = vector.load %arg3[%c0_4, %c0_5] : memref<1x96xf32, #tpu.memory_space<vmem>>, vector<1x96xf32>
    %6 = vector.shape_cast %5 : vector<1x96xf32> to vector<96xf32>
    %7 = vector.shape_cast %6 : vector<96xf32> to vector<1x96xf32>
    %8 = vector.broadcast %7 : vector<1x96xf32> to vector<8x96xf32>
    %9 = arith.addf %4, %8 : vector<8x96xf32>
    %10 = vector.extract_strided_slice %9 {offsets = [0, 0], sizes = [8, 32], strides = [1, 1]} : vector<8x96xf32> to vector<8x32xf32>
    %cst_6 = arith.constant 0.353553385 : f32
    %11 = vector.broadcast %cst_6 : f32 to vector<8x32xf32>
    %12 = arith.mulf %10, %11 : vector<8x32xf32>
    %13 = vector.extract_strided_slice %9 {offsets = [0, 32], sizes = [8, 32], strides = [1, 1]} : vector<8x96xf32> to vector<8x32xf32>
    %14 = vector.extract_strided_slice %9 {offsets = [0, 64], sizes = [8, 32], strides = [1, 1]} : vector<8x96xf32> to vector<8x32xf32>
    %15 = vector.shape_cast %12 : vector<8x32xf32> to vector<8x4x8xf32>
    %16 = tpu.transpose %15, [1, 0, 2] : vector<8x4x8xf32> -> vector<4x8x8xf32>
    %17 = arith.truncf %16 : vector<4x8x8xf32> to vector<4x8x8xbf16>
    %18 = vector.shape_cast %13 : vector<8x32xf32> to vector<8x4x8xf32>
    %19 = tpu.transpose %18, [1, 0, 2] : vector<8x4x8xf32> -> vector<4x8x8xf32>
    %20 = arith.truncf %19 : vector<4x8x8xf32> to vector<4x8x8xbf16>
    %21 = vector.shape_cast %14 : vector<8x32xf32> to vector<8x4x8xf32>
    %22 = tpu.transpose %21, [1, 0, 2] : vector<8x4x8xf32> -> vector<4x8x8xf32>
    %23 = arith.truncf %22 : vector<4x8x8xf32> to vector<4x8x8xbf16>
    "tpu.trace_start"() <{level = 10 : i32, message = "htd,hsd->hts"}> : () -> ()
    %cst_7 = arith.constant dense<0.000000e+00> : vector<4x8x8xf32>
    %24 = tpu.matmul %17, %20, %cst_7 {dimension_numbers = #tpu.dot_dimension_numbers<[2], [2], [1], [1], [0, 0, 0, 1, 1, 1], [0], [0]>} : vector<4x8x8xbf16>, vector<4x8x8xbf16>, vector<4x8x8xf32> -> vector<4x8x8xf32>
    "tpu.trace_stop"() : () -> ()
    %cst_8 = arith.constant dense<0xFF800000> : vector<4x8xf32>
    %25 = vector.multi_reduction <maximumf>, %24, %cst_8 [2] : vector<4x8x8xf32> to vector<4x8xf32>
    %26 = vector.shape_cast %25 : vector<4x8xf32> to vector<4x8x1xf32>
    %27 = vector.broadcast %26 : vector<4x8x1xf32> to vector<4x8x8xf32>
    %28 = arith.subf %24, %27 : vector<4x8x8xf32>
    %29 = math.exp %28 : vector<4x8x8xf32>
    %cst_9 = arith.constant dense<0.000000e+00> : vector<4x8xf32>
    %30 = vector.multi_reduction <add>, %29, %cst_9 [2] : vector<4x8x8xf32> to vector<4x8xf32>
    %31 = vector.shape_cast %30 : vector<4x8xf32> to vector<4x8x1xf32>
    %32 = tpu.reciprocal %31 {approx = true} : vector<4x8x1xf32> -> vector<4x8x1xf32>
    %33 = vector.broadcast %32 : vector<4x8x1xf32> to vector<4x8x8xf32>
    %34 = arith.mulf %29, %33 : vector<4x8x8xf32>
    %35 = arith.truncf %34 : vector<4x8x8xf32> to vector<4x8x8xbf16>
    "tpu.trace_start"() <{level = 10 : i32, message = "hts,hsd->htd"}> : () -> ()
    %cst_10 = arith.constant dense<0.000000e+00> : vector<4x8x8xf32>
    %36 = tpu.matmul %35, %23, %cst_10 {dimension_numbers = #tpu.dot_dimension_numbers<[2], [1], [1], [2], [0, 0, 0, 1, 1, 2], [0], [0]>} : vector<4x8x8xbf16>, vector<4x8x8xbf16>, vector<4x8x8xf32> -> vector<4x8x8xf32>
    "tpu.trace_stop"() : () -> ()
    %37 = tpu.transpose %36, [1, 0, 2] : vector<4x8x8xf32> -> vector<8x4x8xf32>
    %38 = vector.shape_cast %37 : vector<8x4x8xf32> to vector<8x32xf32>
    %39 = arith.truncf %38 : vector<8x32xf32> to vector<8x32xbf16>
    %c0_11 = arith.constant 0 : index
    %c0_12 = arith.constant 0 : index
    %40 = vector.load %arg4[%c0_11, %c0_12] : memref<32x32xbf16, #tpu.memory_space<vmem>>, vector<32x32xbf16>
    %cst_13 = arith.constant dense<0.000000e+00> : vector<8x32xf32>
    %41 = tpu.matmul %39, %40, %cst_13 {dimension_numbers = #tpu.dot_dimension_numbers<[1], [0], [0], [1], [0, 0, 1, 1], [], []>} : vector<8x32xbf16>, vector<32x32xbf16>, vector<8x32xf32> -> vector<8x32xf32>
    %c0_14 = arith.constant 0 : index
    %c0_15 = arith.constant 0 : index
    %42 = vector.load %arg5[%c0_14, %c0_15] : memref<1x32xf32, #tpu.memory_space<vmem>>, vector<1x32xf32>
    %43 = vector.shape_cast %42 : vector<1x32xf32> to vector<32xf32>
    %44 = vector.shape_cast %43 : vector<32xf32> to vector<1x32xf32>
    %45 = vector.broadcast %44 : vector<1x32xf32> to vector<8x32xf32>
    %46 = arith.addf %41, %45 : vector<8x32xf32>
    %c0_16 = arith.constant 0 : index
    %c0_17 = arith.constant 0 : index
    %c0_18 = arith.constant 0 : index
    %47 = vector.load %arg6[%c0_16, %c0_17, %c0_18] : memref<1x8x32xf32, #tpu.memory_space<vmem>>, vector<1x8x32xf32>
    %48 = vector.shape_cast %47 : vector<1x8x32xf32> to vector<8x32xf32>
    %49 = vector.shape_cast %46 : vector<8x32xf32> to vector<1x8x32xf32>
    tpu.vector_store %arg6[%c0_16, %c0_17, %c0_18], %49 {strides = array<i32>} : memref<1x8x32xf32, #tpu.memory_space<vmem>>, vector<1x8x32xf32>,
    return
  }
  func.func @transform_0(%arg0: i32) -> (i32, i32, i32) {
    %c0_i32 = arith.constant 0 : i32
    %c0_i32_0 = arith.constant 0 : i32
    %c0_i32_1 = arith.constant 0 : i32
    return %arg0, %c0_i32, %c0_i32_0 : i32, i32, i32
  }
  func.func @transform_1(%arg0: i32) -> (i32, i32) {
    %c0_i32 = arith.constant 0 : i32
    %c0_i32_0 = arith.constant 0 : i32
    %c0_i32_1 = arith.constant 0 : i32
    return %c0_i32, %c0_i32_0 : i32, i32
  }
  func.func @transform_2(%arg0: i32) -> (i32, i32) {
    %c0_i32 = arith.constant 0 : i32
    %c0_i32_0 = arith.constant 0 : i32
    %c0_i32_1 = arith.constant 0 : i32
    return %c0_i32, %c0_i32_0 : i32, i32
  }
  func.func @transform_3(%arg0: i32) -> (i32, i32) {
    %c0_i32 = arith.constant 0 : i32
    %c0_i32_0 = arith.constant 0 : i32
    %c0_i32_1 = arith.constant 0 : i32
    return %c0_i32, %c0_i32_0 : i32, i32
  }
  func.func @transform_4(%arg0: i32) -> (i32, i32) {
    %c0_i32 = arith.constant 0 : i32
    %c0_i32_0 = arith.constant 0 : i32
    %c0_i32_1 = arith.constant 0 : i32
    return %c0_i32, %c0_i32_0 : i32, i32
  }
  func.func @transform_5(%arg0: i32) -> (i32, i32, i32) {
    %c0_i32 = arith.constant 0 : i32
    %c0_i32_0 = arith.constant 0 : i32
    %c0_i32_1 = arith.constant 0 : i32
    return %arg0, %c0_i32, %c0_i32_0 : i32, i32, i32
  }
}

</mosaic_0001>

<bundles_post_ra>
// kernel: tpu_custom_call.1
= control target key start
LH: loop header
LB: loop body
LE: loop exit
PB: predicated region body
PF: predicated region fallthrough
CT: control target
= control target key end

     0   :  { %10 = vsyncpa [#allocation3], 0  ;;  %s2319_s0 = inlined_call_operand.hbm [shape: f32[2,8,32], index: 0, kind: input, shape index: {}]   ;;  %s2320_s1 = inlined_call_operand.hbm [shape: bf16[32,96], index: 1, kind: input, shape index: {}]   ;;  %s2321_s2 = inlined_call_operand.vmem [shape: f32[1,96], index: 2, kind: input, shape index: {}]   ;;  %s2322_s3 = inlined_call_operand.hbm [shape: bf16[32,32], index: 3, kind: input, shape index: {}]   ;;  %s2323_s4 = inlined_call_operand.vmem [shape: f32[1,32], index: 4, kind: input, shape index: {}]   ;;  %s2324_s5 = inlined_call_operand.hbm [shape: f32[2,8,32], index: 5, kind: output, shape index: {}]  }
   0x1   :  { %12 = vsyncpa [#allocation3 + $0x1], 0 }
   0x2   :  { %13 = vsyncpa [#allocation6], 0 }
   0x3   :  { %14 = vsyncpa [#allocation4], 0 }
   0x4   :  { %16 = vsyncpa [#allocation4 + $0x1], 0  ;;  %s1968_s18 = smov 0   ;;  %s1970_s19 = smov 0  }
   0x5   :  { %s1972_s20 = smov 0   ;;  %s1974_s21 = smov 0  }
   0x6 LB: > { %s1989_s22 = sadd.s32 4294967295, %s1918_s21   ;;  %s1543_s23 = sadd.s32 4294967294, %s1918_s21   ;;  %s1918_s21 = sphi %s1974_s21, %s2346_s21   ;;  %s1914_s20 = sphi %s1972_s20, %s2345_s20   ;;  %s1910_s19 = sphi %s1970_s19, %s2344_s19   ;;  %s1906_s18 = sphi %s1968_s18, %s2343_s18  }
   0x7   : > { %p42_p0 = scmp.ne.s32.totalorder %s1910_s19, %s1906_s18  ;;  %p2325_p1 = scmp.eq.s32.totalorder %s1989_s22, 0 }
   0x8   : > { %p156_p3 = scmp.eq.s32.totalorder %s1543_s23, 1  ;;  %p1544_p5 = scmp.ge.s32.totalorder %s1918_s21, 1 }
   0x9   : > { %p1998_p4 = por %p2325_p1, %p42_p0  ;;  %p163_p7 = scmp.lt.s32.totalorder %s1918_s21, 3 }
   0xa   : > { %p2003_p6 = por %p156_p3, %p42_p0  ;;  %s1920_s27 = smov [#allocation5]  }
   0xb   : > { %s2329_s24 = scalar_select %p1998_p4, 1, 0 }
   0xc   : > { %s2330_s25 = scalar_select %p2003_p6, 1, 0 }
   0xd   : > { %p2008_p8 = pnand %p1544_p5, %p163_p7  ;;  %s175_s28 = sshll.u32 %s1920_s27, 4  ;;  %s176_s28 = int_to_ptr.vmem [resolvable:$true] %s175_s28 }
   0xe   : > { %s1921_s30 = smov [#allocation7]   ;;  %s1781_s7 = scalar_lea.vmem %s176_s28, 256 }
   0xf   : > { %s2331_s26 = scalar_select %p2008_p8, 1, 0 }
  0x10   : > { %p1681_p9 = pneg %p2008_p8  ;;  %s191_s6 = sshll.u32 %s1921_s30, 4  ;;  %s192_s6 = int_to_ptr.vmem [resolvable:$true] %s191_s6 }
  0x11   : > { %p1782_p13 = scmp.ne.s32.totalorder %s176_s28, %s1781_s7  ;;  %p1789_p5 = scmp.lt.s32.totalorder %s176_s28, %s176_s28 }
  0x12   : > { %p2017_p11 = pnand %p1681_p9, %p2325_p1  ;;  %p1790_p7 = scmp.lt.s32.totalorder %s1781_s7, %s1781_s7 }
  0x14   : > { %p1772_p12 = pneg %p2017_p11  ;;  %p1791_p10 = por %p1790_p7, %p1789_p5 }
  0x16   : > { %p1784_p0 = pnand %p1782_p13, %p1772_p12 }
  0x18   : > { %p1785_p3 = pneg %p1784_p0 }
  0x1a   : > { %p1792_p9 = pnand %p1791_p10, %p1785_p3 }
  0x1c   : > { %1795 = shalt.err (!%p1792_p9)
}
  0x1d   : > { %s1922_s8 = smov 64   ;;  %s1923_s9 = smov 4  }
  0x1e   : > { %1684 = dma.hbm_to_vmem [thread:$0]  (!%p2017_p11), %s2320_s1, 256, %s176_s28, [#allocation6], %s1922_s8, %s1922_s8, %s1923_s9  }
  0x1f   : > { %s1807_s12 = scalar_lea.vmem %s192_s6, 256  ;;  %p1815_p2 = scmp.lt.s32.totalorder %s192_s6, %s192_s6 }
  0x20   : > { %p1808_p1 = scmp.ne.s32.totalorder %s192_s6, %s1807_s12  ;;  %p1816_p6 = scmp.lt.s32.totalorder %s1807_s12, %s1807_s12 }
  0x22   : > { %p1810_p13 = pnand %p1808_p1, %p1772_p12  ;;  %p1817_p5 = por %p1816_p6, %p1815_p2 }
  0x24   : > { %p1811_p0 = pneg %p1810_p13 }
  0x26   : > { %p1818_p10 = pnand %p1817_p5, %p1811_p0 }
  0x28   : > { %1821 = shalt.err (!%p1818_p10)
}
  0x29   : > { %1687 = dma.hbm_to_vmem [thread:$0]  (!%p2017_p11), %s2322_s3, 256, %s192_s6, [#allocation6], %s1922_s8, %s1922_s8, %s1923_s9  }
  0x2a   : > { %s2040_s15 = sadd.s32 1, %s1918_s21   ;;  %s29_s16 = sadd.s32 1, %s1914_s20 }
  0x2b   : > { %s26_s17 = ssub.s32 %s1918_s21, %s2040_s15  ;;  %p36_p1 = scmp.ne.s32.totalorder %s1914_s20, %s1910_s19 }
  0x2c   : > { %p27_p2 = scmp.eq.s32.totalorder %s26_s17, 0  ;;  %p37_p6 = scmp.eq.s32.totalorder %s1918_s21, 0 }
  0x2d   : > { %p2333_p12 = scmp.eq.s32.totalorder %s1989_s22, 1  ;;  %p1698_p7 = scmp.lt.s32.totalorder %s1918_s21, 2 }
  0x2e   : > { %s2056_s27 = scalar_select %p27_p2, %s1914_s20, %s29_s16  }
  0x2f   : > { %p2050_p3 = por %p2333_p12, %p36_p1  ;;  %p38_p9 = por %p37_p6, %p36_p1 }
  0x30   : > { %s208_s28 = sand.u32 1, %s1914_s20   ;;  %s1549_s30 = sshll.u32 %s1918_s21, 7 }
  0x31   : > { %s2334_s23 = scalar_select %p2050_p3, 1, 0 }
  0x32   : > { %s1548_s29 = sshll.u32 %s208_s28, 3  ;;  %s2063_s8 = scalar_lea.hbm %s2319_s0, %s1549_s30 }
  0x33   : > { %s212_s9 = scalar_lea.vmem [#allocation2], %s1548_s29  ;;  %p2065_p11 = pnand %p1698_p7, %p38_p9 }
  0x34   : > { %s219_s10 = sshll.u32 %s212_s9, 4  ;;  %s209_s12 = scalar_lea.sflag [#allocation3], %s208_s28  ;;  %s220_s10 = int_to_ptr.vmem [resolvable:$true] %s219_s10 }
  0x35   : > { %s1822_s13 = scalar_lea.hbm %s2063_s8, 128  ;;  %p1824_p0 = pneg %p2065_p11 }
  0x36   : > { %p1823_p13 = scmp.ne.s32.totalorder %s2063_s8, %s1822_s13  ;;  %s1827_s17 = scalar_lea.hbm %s2319_s0, 256 }
  0x37   : > { %p1828_p1 = scmp.lt.s32.totalorder %s2063_s8, %s2319_s0  ;;  %p1829_p2 = scmp.lt.s32.totalorder %s1827_s17, %s1822_s13 }
  0x38   : > { %p1825_p5 = pnand %p1824_p0, %p1823_p13 }
  0x39   : > { %p1830_p6 = por %p1829_p2, %p1828_p1 }
  0x3a   : > { %p1826_p10 = pneg %p1825_p5 }
  0x3c   : > { %p1831_p12 = pnand %p1830_p6, %p1826_p10 }
  0x3e   : > { %1834 = shalt.err (!%p1831_p12)
}
  0x3f   : > { %s1835_s6 = scalar_lea.vmem %s220_s10, 128  ;;  %s1924_s28 = smov [#allocation2]  }
  0x40   : > { %p1836_p7 = scmp.ne.s32.totalorder %s220_s10, %s1835_s6  ;;  %s1840_s7 = sshll.u32 %s1924_s28, 4  ;;  %s1841_s7 = int_to_ptr.vmem [resolvable:$false] %s1840_s7 }
  0x41   : > { %s1842_s9 = scalar_lea.vmem %s1841_s7, 256  ;;  %p1843_p13 = scmp.lt.s32.totalorder %s220_s10, %s1841_s7 }
  0x42   : > { %p1838_p9 = pnand %p1836_p7, %p1824_p0  ;;  %p1844_p5 = scmp.lt.s32.totalorder %s1842_s9, %s1835_s6 }
  0x44   : > { %p1839_p3 = pneg %p1838_p9  ;;  %p1845_p4 = por %p1844_p5, %p1843_p13 }
  0x46   : > { %p1846_p8 = pnand %p1845_p4, %p1839_p3 }
  0x48   : > { %1849 = shalt.err (!%p1846_p8)
}
  0x49   : > { %1691 = dma.hbm_to_vmem [thread:$0]  (!%p2065_p11), %s2063_s8, 128, %s220_s10, %s209_s12  }
  0x4a   : > { %p2336_p10 = scmp.ne.s32.totalorder %s2331_s26, 0 }
  0x4b   : > { %s2086_s13 = sand.u32 (!%p2336_p10), 1, %s1910_s19   ;;  %p2337_p4 = scmp.ne.s32.totalorder (!%p2336_p10), %s2329_s24, 0 }
  0x4c   : > { %228 = sbr.rel (%p2336_p10) target bundleno = 1659 (0x67b), region = 40  ;;  %s1551_s14 = sshll.u32 (!%p2336_p10), %s2086_s13, 3 }
  0x4d   : > { %s231_s16 = scalar_lea.sflag (!%p2336_p10), [#allocation3], %s2086_s13  ;;  %s234_s17 = scalar_lea.vmem (!%p2336_p10), [#allocation2], %s1551_s14 }
  0x51   : > { %1893 = dma.done.wait (%p2337_p4), %s231_s16, 128  }
  0x52   : > { %1895 = vsyncadd (%p2337_p4), %s231_s16, 4294967168  ;;  %p2338_p8 = scmp.eq.s32.totalorder %s1989_s22, 0 }
  0x54   : > { %1897 = dma.done.wait (%p2338_p8), [#allocation6], 512   ;;  %p2339_p3 = pmov %p2338_p8 }
  0x55   : > { %v1925_v0 = vmov 0.0   ;;  %vm1926_vm0 = vmmov 0   ;;  %v1750_v1 = vld [vmem:[#allocation5 + $0x8] sm:$0xff]   ;;  %v1751_v2 = vld [vmem:[#allocation5] sm:$0xff]   ;;  %v270_v3 = vld [vmem:[%s234_s17] sm:$0xff]  ;;  %vm295_vm1 = vcmask 261120   ;;  %v355_v17 = vlaneseq }
  0x56   : > { %1899 = vsyncadd (%p2339_p3), [#allocation6], 4294966784  ;;  %1605 = vmatprep.subr.bf16.mxu0 %v1925_v0  ;;  %1609 = vmatprep.mubr.msk.bf16.mxu0 %vm1926_vm0, %v1925_v0  ;;  %v271_v4 = vpack.c.bf16 %v270_v3, %v270_v3  ;;  %v1555_v5 = vld [vmem:[%s2321_s2] ss:$0 sm:$0xff]  ;;  %s1927_s8 = smov 104   ;;  %s1928_s10 = smov 120  }
  0x57   : > { %1613 = vmatprep.subr.bf16.mxu1 %v1925_v0  ;;  %1615 = vmatprep.mubr.msk.bf16.mxu1 %vm1926_vm0, %v1925_v0  ;;  %s1929_s11 = smov 96   ;;  %s1930_s12 = smov 112   ;;  %v1931_v15 = vmov 1983009808   ;;  %v1932_v18 = vmov 1934713408  }
  0x58   : > { %1606 = vmatpush3.bf16.msra.mxu0 %v1750_v1  ;;  %v353_v16 = vunpack.c.l.s4 %v1931_v15  ;;  %v385_v19 = vunpack.c.l.s4 %v1932_v18  ;;  %v356_v21 = vshrl.u32 %v355_v17, 7  ;;  %vm801_vm2 = vcmask 64512   ;;  %s1933_s30 = smov 64   ;;  %s1934_s29 = smov 16  }
  0x59   : > { %1607 = vmatprep.subr.bf16.mxu0 %v1925_v0  ;;  %vm1037_vm3 = vcmask 1043456   ;;  %s1935_s6 = smov 8   ;;  %s1936_s28 = smov 24   ;;  %vm1368_vm4 = vcmask 130048   ;;  %vm1370_vm5 = vcmask 195584  }
  0x5a   : > { %v354_v20 = vunpack.c.0.s8 %v353_v16  ;;  %v386_v24 = vunpack.c.0.s8 %v385_v19  ;;  %s1580_s16 = sshll.u32 %s1989_s22, 7  ;;  %s268_s17 = scalar_lea.vmem [#allocation8], %s1551_s14 }
  0x5b   : > { %s1454_s24 = sshll.u32 %s268_s17, 4  ;;  %s1441_s22 = scalar_lea.sflag [#allocation4], %s2086_s13  ;;  %s2277_s24 = int_to_ptr.vmem [resolvable:$true] %s1454_s24 }
  0x5c   : > { %1608 = vmatpush3.bf16.msra.mxu0 %v1751_v2  ;;  %v2130_v25 = vsub.s32 %v354_v20, %v356_v21  ;;  %v2132_v32 = vsub.s32 %v386_v24, %v356_v21  ;;  %p2340_p0 = scmp.ne.s32.totalorder %s2334_s23, 0  ;;  %s1937_s14 = smov [#allocation8]  }
  0x5d   : > { %1619 = vmatprep.subr.bf16.mxu0 %v1925_v0 }
  0x5f   : > { %1610 = vmatmul.mubr.msk.bf16.vlgmr.msra.gmra.mxu0 %vm295_vm1, %v271_v4 }
  0x60   : > { %1621 = vmatprep.mubr.msk.bf16.mxu0 %vm1926_vm0, %v1925_v0 }
 0x11f   : > { %v333_v6 = vpop.f32.mrf.mxu0 }
 0x120   : > { %v2114_v7 = vadd.f32 %v1555_v5, %v333_v6 }
 0x121   : > { %v1611_v8 = vpop.f32.mrf.mxu0 }
 0x122   : > { %495 = vrot.lane.b32.xlu1 %v2114_v7, %s1927_s8  ;;  %491 = vrot.lane.b32.xlu0 %v2114_v7, %s1928_s10  ;;  %v339_v14 = vmul.f32 0.35355338, %v2114_v7 }
 0x123   : > { %v336_v9 = vpop.f32.mrf.mxu0 }
 0x125   : > { %v1612_v10 = vpop.f32.mrf.mxu0 }
 0x126   : > { %497 = vrot.lane.b32.xlu1 %v2114_v7, %s1929_s11  ;;  %493 = vrot.lane.b32.xlu0 %v2114_v7, %s1930_s12 }
 0x194   : > { %v2120_v11 = vpop.permute.xlu0 %491  ;;  %v2123_v12 = vpop.permute.xlu1 %495 }
 0x195   : > { %499 = vrot.lane.b32.xlu0 %v2120_v11, %s1929_s11 }
 0x198   : > { %v2125_v13 = vpop.permute.xlu0 %493  ;;  %v498_v22 = vpop.permute.xlu1 %497 }
 0x199   : > { %503 = vrot.lane.b32.xlu0 %v2123_v12, %s1929_s11  ;;  %501 = vrot.lane.b32.xlu1 %v2125_v13, %s1929_s11  ;;  %s1850_s11 = scalar_lea.vmem %s2277_s24, 128 }
 0x19a   : > { %p1851_p11 = scmp.ne.s32.totalorder %s2277_s24, %s1850_s11 }
 0x19c   : > { %p1852_p1 = pnand %p1851_p11, %p2340_p0 }
 0x19d   : > { %344 = vrot.lane.b32.xlu0 %v339_v14, %s1930_s12  ;;  %341 = vrot.lane.b32.xlu1 %v339_v14, %s1928_s10  ;;  %s2275_s10 = scalar_lea.hbm %s2324_s5, %s1580_s16  ;;  %s1854_s12 = sshll.u32 %s1937_s14, 4  ;;  %s1855_s12 = int_to_ptr.vmem [resolvable:$false] %s1854_s12 }
 0x19e   : > { %p1853_p2 = pneg %p1852_p1  ;;  %p1857_p6 = scmp.lt.s32.totalorder %s2277_s24, %s1855_s12 }
 0x1a1   : > { %347 = vrot.lane.b32.xlu1 %v339_v14, %s1927_s8 }
 0x207   : > { %v500_v23 = vpop.permute.xlu0 %499 }
 0x20b   : > { %v502_v26 = vpop.permute.xlu1 %501  ;;  %v504_v27 = vpop.permute.xlu0 %503 }
 0x20c   : > { %v509_v28 = vcombine.low %v498_v22, %v502_v26  ;;  %v510_v29 = vcombine.high %v498_v22, %v502_v26  ;;  %v525_v30 = vcombine.low %v500_v23, %v504_v27  ;;  %v526_v31 = vcombine.high %v500_v23, %v504_v27 }
 0x20e   : > { %v517_v33 = vrot.slane %v509_v28, %v2130_v25  ;;  %v524_v34 = vrot.slane %v510_v29, %v2130_v25  ;;  %v533_v35 = vrot.slane %v525_v30, %v2130_v25  ;;  %v540_v36 = vrot.slane %v526_v31, %v2130_v25 }
 0x20f   : > { %v342_v37 = vpop.permute.xlu1 %341  ;;  %v345_v42 = vpop.permute.xlu0 %344 }
 0x210   : > { %v541_v38 = vcombine.low %v517_v33, %v533_v35  ;;  %v542_v39 = vcombine.high %v517_v33, %v533_v35  ;;  %v557_v40 = vcombine.low %v524_v34, %v540_v36  ;;  %v558_v41 = vcombine.high %v524_v34, %v540_v36 }
 0x211   : > { %v350_v47 = vcombine.low %v339_v14, %v345_v42  ;;  %v351_v48 = vcombine.high %v339_v14, %v345_v42 }
 0x212   : > { %v549_v43 = vrot.slane %v541_v38, %v2132_v32  ;;  %v556_v44 = vrot.slane %v542_v39, %v2132_v32  ;;  %v565_v45 = vrot.slane %v557_v40, %v2132_v32  ;;  %v572_v46 = vrot.slane %v558_v41, %v2132_v32 }
 0x213   : > { %v348_v49 = vpop.permute.xlu1 %347  ;;  %v358_v60 = vrot.slane %v350_v47, %v2130_v25  ;;  %v365_v61 = vrot.slane %v351_v48, %v2130_v25 }
 0x214   : > { %v577_v50 = vcombine.low %v549_v43, %v556_v44  ;;  %v1561_v51 = vcombine.high %v549_v43, %v556_v44  ;;  %v593_v52 = vcombine.low %v565_v45, %v572_v46  ;;  %v1562_v53 = vcombine.high %v565_v45, %v572_v46 }
 0x215   : > { %v366_v54 = vcombine.low %v342_v37, %v348_v49  ;;  %v367_v55 = vcombine.high %v342_v37, %v348_v49 }
 0x216   : > { %v584_v56 = vrot.slane %v577_v50, %v2130_v25  ;;  %v592_v57 = vrot.slane %v1561_v51, %v2130_v25  ;;  %v600_v58 = vrot.slane %v593_v52, %v2130_v25  ;;  %v608_v59 = vrot.slane %v1562_v53, %v2130_v25 }
 0x217   : > { %v374_v62 = vrot.slane %v366_v54, %v2130_v25  ;;  %v381_v63 = vrot.slane %v367_v55, %v2130_v25 }
 0x218   : > { %v609_v1 = vcombine.low %v584_v56, %v592_v57  ;;  %v625_v2 = vcombine.low %v600_v58, %v608_v59  ;;  %v610_v10 = vcombine.high %v584_v56, %v592_v57  ;;  %v626_v14 = vcombine.high %v600_v58, %v608_v59 }
 0x219   : > { %v382_v3 = vcombine.low %v358_v60, %v374_v62  ;;  %v383_v4 = vcombine.high %v358_v60, %v374_v62  ;;  %v398_v5 = vcombine.low %v365_v61, %v381_v63  ;;  %v399_v6 = vcombine.high %v365_v61, %v381_v63 }
 0x21a   : > { %v617_v8 = vrot.slane %v609_v1, %v2132_v32  ;;  %v633_v9 = vrot.slane %v625_v2, %v2132_v32  ;;  %v624_v28 = vrot.slane %v610_v10, %v2132_v32  ;;  %v640_v29 = vrot.slane %v626_v14, %v2132_v32 }
 0x21b   : > { %v390_v15 = vrot.slane %v382_v3, %v2132_v32  ;;  %v397_v16 = vrot.slane %v383_v4, %v2132_v32  ;;  %v406_v17 = vrot.slane %v398_v5, %v2132_v32  ;;  %v413_v18 = vrot.slane %v399_v6, %v2132_v32 }
 0x21c   : > { %v641_v19 = vcombine.low %v617_v8, %v633_v9  ;;  %v642_v20 = vcombine.high %v617_v8, %v633_v9  ;;  %v643_v39 = vcombine.low %v624_v28, %v640_v29  ;;  %v644_v40 = vcombine.high %v624_v28, %v640_v29 }
 0x21d   : > { %v418_v21 = vcombine.low %v390_v15, %v397_v16  ;;  %v1559_v22 = vcombine.high %v390_v15, %v397_v16  ;;  %v434_v23 = vcombine.low %v406_v17, %v413_v18  ;;  %v1560_v24 = vcombine.high %v406_v17, %v413_v18 }
 0x21e   : > { %v645_v26 = vpack.c.bf16 %v641_v19, %v641_v19  ;;  %v646_v27 = vpack.c.bf16 %v642_v20, %v642_v20  ;;  %v647_v47 = vpack.c.bf16 %v643_v39, %v643_v39  ;;  %v648_v48 = vpack.c.bf16 %v644_v40, %v644_v40 }
 0x21f   : > { %v425_v30 = vrot.slane %v418_v21, %v2130_v25  ;;  %v433_v31 = vrot.slane %v1559_v22, %v2130_v25  ;;  %v441_v33 = vrot.slane %v434_v23, %v2130_v25  ;;  %v449_v34 = vrot.slane %v1560_v24, %v2130_v25 }
 0x220   : > { %v806_v35 = vsel %vm801_vm2, %v645_v26, 0  ;;  %v852_v36 = vsel %vm801_vm2, %v646_v27, 0  ;;  %v898_v53 = vsel %vm801_vm2, %v647_v47, 0  ;;  %v944_v54 = vsel %vm801_vm2, %v648_v48, 0 }
 0x221   : > { %1614 = vmatpush3.bf16.xpose.msra.mxu1 %v806_v35  ;;  %1620 = vmatpush3.bf16.xpose.msra.mxu0 %v852_v36  ;;  %v450_v37 = vcombine.low %v425_v30, %v433_v31  ;;  %v466_v38 = vcombine.low %v441_v33, %v449_v34  ;;  %v451_v42 = vcombine.high %v425_v30, %v433_v31 }
 0x222   : > { %1625 = vmatprep.subr.bf16.mxu1 %v1925_v0  ;;  %1631 = vmatprep.subr.bf16.mxu0 %v1925_v0  ;;  %v467_v43 = vcombine.high %v441_v33, %v449_v34 }
 0x223   : > { %v458_v41 = vrot.slane %v450_v37, %v2132_v32  ;;  %v474_v44 = vrot.slane %v466_v38, %v2132_v32  ;;  %v465_v51 = vrot.slane %v451_v42, %v2132_v32 }
 0x224   : > { %v481_v52 = vrot.slane %v467_v43, %v2132_v32 }
 0x225   : > { %v482_v45 = vcombine.low %v458_v41, %v474_v44  ;;  %v483_v46 = vcombine.high %v458_v41, %v474_v44 }
 0x226   : > { %v484_v55 = vcombine.low %v465_v51, %v481_v52  ;;  %v485_v56 = vcombine.high %v465_v51, %v481_v52 }
 0x227   : > { %v486_v49 = vpack.c.bf16 %v482_v45, %v482_v45  ;;  %v487_v50 = vpack.c.bf16 %v483_v46, %v483_v46 }
 0x228   : > { %v488_v57 = vpack.c.bf16 %v484_v55, %v484_v55  ;;  %v489_v58 = vpack.c.bf16 %v485_v56, %v485_v56 }
 0x229   : > { %1616 = vmatmul.mubr.msk.bf16.vlgmr.msra.gmra.mxu1 %vm801_vm2, %v486_v49  ;;  %1622 = vmatmul.mubr.msk.bf16.vlgmr.msra.gmra.mxu0 %vm801_vm2, %v487_v50 }
 0x22a   : > { %1626 = vmatpush3.bf16.xpose.msra.mxu1 %v898_v53  ;;  %1632 = vmatpush3.bf16.xpose.msra.mxu0 %v944_v54 }
 0x22b   : > { %1627 = vmatprep.mubr.msk.bf16.mxu1 %vm1926_vm0, %v1925_v0  ;;  %1633 = vmatprep.mubr.msk.bf16.mxu0 %vm1926_vm0, %v1925_v0 }
 0x22c   : > { %1637 = vmatprep.subr.bf16.mxu1 %v1925_v0  ;;  %1643 = vmatprep.subr.bf16.mxu0 %v1925_v0 }
 0x231   : > { %1628 = vmatmul.mubr.msk.bf16.vlgmr.msra.gmra.mxu1 %vm801_vm2, %v488_v57  ;;  %1634 = vmatmul.mubr.msk.bf16.vlgmr.msra.gmra.mxu0 %vm801_vm2, %v489_v58 }
 0x232   : > { %1639 = vmatprep.mubr.msk.bf16.mxu1 %vm1926_vm0, %v1925_v0  ;;  %1645 = vmatprep.mubr.msk.bf16.mxu0 %vm1926_vm0, %v1925_v0 }
 0x2e9   : > { %v842_v59 = vpop.f32.mrf.mxu1  ;;  %v888_v60 = vpop.f32.mrf.mxu0 }
 0x2ea   : > { %v986_v61 = vsel %vm801_vm2, %v842_v59, -inf  ;;  %v989_v62 = vsel %vm801_vm2, %v888_v60, -inf }
 0x2eb   : > { %987 = vmax.xlane.f32.xlu0 %v986_v61  ;;  %v1617_v63 = vpop.f32.mrf.mxu1  ;;  %990 = vmax.xlane.f32.xlu1 %v989_v62  ;;  %v1623_v1 = vpop.f32.mrf.mxu0 }
 0x2ed   : > { %v845_v2 = vpop.f32.mrf.mxu1  ;;  %v891_v3 = vpop.f32.mrf.mxu0 }
 0x2ef   : > { %v1618_v4 = vpop.f32.mrf.mxu1  ;;  %v1624_v5 = vpop.f32.mrf.mxu0 }
 0x2f1   : > { %v934_v6 = vpop.f32.mrf.mxu1  ;;  %v980_v8 = vpop.f32.mrf.mxu0 }
 0x2f2   : > { %v992_v9 = vsel %vm801_vm2, %v934_v6, -inf  ;;  %v995_v17 = vsel %vm801_vm2, %v980_v8, -inf }
 0x2f3   : > { %993 = vmax.xlane.f32.xlu0 %v992_v9  ;;  %v1629_v10 = vpop.f32.mrf.mxu1  ;;  %v1635_v14 = vpop.f32.mrf.mxu0 }
 0x2f5   : > { %v937_v15 = vpop.f32.mrf.mxu1  ;;  %v983_v16 = vpop.f32.mrf.mxu0 }
 0x2f7   : > { %v1630_v18 = vpop.f32.mrf.mxu1  ;;  %996 = vmax.xlane.f32.xlu0 %v995_v17  ;;  %v1636_v19 = vpop.f32.mrf.mxu0 }
 0x2fc   : > { %649 = vrot.lane.b32.xlu1 %v2114_v7, %s1933_s30 }
 0x374   : > { %v988_v20 = vpop.xlane.xlu0 %987  ;;  %v991_v21 = vpop.xlane.xlu1 %990 }
 0x375   : > { %v998_v22 = vsub.f32 %v842_v59, %v988_v20  ;;  %v999_v23 = vsub.f32 %v888_v60, %v991_v21 }
 0x377   : > { %v1002_v24 = vmul.f32 1.442695, %v998_v22  ;;  %v1004_v26 = vmul.f32 1.442695, %v999_v23 }
 0x379   : > { %1754 = vpow2.f32 %v1002_v24 }
 0x37a   : > { %1756 = vpow2.f32 %v1004_v26 }
 0x37c   : > { %v994_v7 = vpop.xlane.xlu0 %993 }
 0x37d   : > { %v1000_v31 = vsub.f32 %v934_v6, %v994_v7 }
 0x37f   : > { %v1006_v35 = vmul.f32 1.442695, %v1000_v31 }
 0x380   : > { %v997_v33 = vpop.xlane.xlu0 %996 }
 0x381   : > { %v1001_v34 = vsub.f32 %v980_v8, %v997_v33  ;;  %1758 = vpow2.f32 %v1006_v35 }
 0x383   : > { %v1008_v36 = vmul.f32 1.442695, %v1001_v34 }
 0x385   : > { %1760 = vpow2.f32 %v1008_v36 }
 0x386   : > { %v2191_v27 = vpop.eup %1754 }
 0x387   : > { %v2193_v28 = vpop.eup %1756  ;;  %v1010_v29 = vsel %vm801_vm2, %v2191_v27, 0.0 }
 0x388   : > { %1011 = vadd.xlane.f32.xlu1 %v1010_v29  ;;  %v1013_v30 = vsel %vm801_vm2, %v2193_v28, 0.0 }
 0x389   : > { %1014 = vadd.xlane.f32.xlu0 %v1013_v30 }
 0x38e   : > { %v2202_v37 = vpop.eup %1758 }
 0x38f   : > { %v1016_v39 = vsel %vm801_vm2, %v2202_v37, 0.0 }
 0x392   : > { %v2204_v38 = vpop.eup %1760 }
 0x399   : > { %653 = vrot.lane.b32.xlu1 %v2125_v13, %s1933_s30 }
 0x39d   : > { %655 = vrot.lane.b32.xlu1 %v2123_v12, %s1933_s30  ;;  %v1019_v12 = vsel %vm801_vm2, %v2204_v38, 0.0 }
 0x39f   : > { %651 = vrot.lane.b32.xlu0 %v2120_v11, %s1933_s30  ;;  %v650_v11 = vpop.permute.xlu1 %649  ;;  %s1856_s30 = scalar_lea.vmem %s1855_s12, 256 }
 0x3a0   : > { %p1858_p12 = scmp.lt.s32.totalorder %s1856_s30, %s1850_s11 }
 0x3a2   : > { %p1859_p7 = por %p1858_p12, %p1857_p6 }
 0x3a4   : > { %p1860_p9 = pnand %p1859_p7, %p1853_p2 }
 0x3be   : > { %1017 = vadd.xlane.f32.xlu0 %v1016_v39 }
 0x3c1   : > { %1020 = vadd.xlane.f32.xlu1 %v1019_v12 }
 0x411   : > { %v1012_v13 = vpop.xlane.xlu1 %1011 }
 0x412   : > { %v1015_v40 = vpop.xlane.xlu0 %1014  ;;  %1762 = vrcp.f32 %v1012_v13 }
 0x413   : > { %1764 = vrcp.f32 %v1015_v40 }
 0x415   : > { %v654_v41 = vpop.permute.xlu1 %653 }
 0x416   : > { %v661_v42 = vcombine.low %v650_v11, %v654_v41  ;;  %v662_v43 = vcombine.high %v650_v11, %v654_v41  ;;  %v652_v44 = vpop.permute.xlu0 %651 }
 0x418   : > { %v669_v48 = vrot.slane %v661_v42, %v2130_v25  ;;  %v676_v49 = vrot.slane %v662_v43, %v2130_v25  ;;  %v1752_v43 = vld [vmem:[#allocation7 + $0x8] sm:$0xff]  }
 0x419   : > { %v656_v45 = vpop.permute.xlu1 %655 }
 0x41a   : > { %v677_v46 = vcombine.low %v652_v44, %v656_v45  ;;  %v678_v47 = vcombine.high %v652_v44, %v656_v45 }
 0x41c   : > { %v685_v50 = vrot.slane %v677_v46, %v2130_v25  ;;  %v692_v51 = vrot.slane %v678_v47, %v2130_v25 }
 0x41e   : > { %v693_v52 = vcombine.low %v669_v48, %v685_v50  ;;  %v694_v53 = vcombine.high %v669_v48, %v685_v50  ;;  %v709_v54 = vcombine.low %v676_v49, %v692_v51  ;;  %v710_v55 = vcombine.high %v676_v49, %v692_v51 }
 0x41f   : > { %v1763_v10 = vpop.eup %1762 }
 0x420   : > { %v701_v56 = vrot.slane %v693_v52, %v2132_v32  ;;  %v708_v57 = vrot.slane %v694_v53, %v2132_v32  ;;  %v717_v58 = vrot.slane %v709_v54, %v2132_v32  ;;  %v724_v59 = vrot.slane %v710_v55, %v2132_v32  ;;  %v1765_v14 = vpop.eup %1764 }
 0x421   : > { %v1026_v26 = vmul.f32 %v1763_v10, %v2191_v27  ;;  %v1027_v29 = vmul.f32 %v1765_v14, %v2193_v28 }
 0x422   : > { %v729_v60 = vcombine.low %v701_v56, %v708_v57  ;;  %v1563_v61 = vcombine.high %v701_v56, %v708_v57  ;;  %v745_v62 = vcombine.low %v717_v58, %v724_v59  ;;  %v1564_v63 = vcombine.high %v717_v58, %v724_v59 }
 0x423   : > { %v1030_v34 = vpack.c.bf16 %v1026_v26, %v1026_v26  ;;  %v1031_v35 = vpack.c.bf16 %v1027_v29, %v1027_v29 }
 0x424   : > { %v736_v1 = vrot.slane %v729_v60, %v2130_v25  ;;  %v744_v2 = vrot.slane %v1563_v61, %v2130_v25  ;;  %v752_v3 = vrot.slane %v745_v62, %v2130_v25  ;;  %v760_v4 = vrot.slane %v1564_v63, %v2130_v25 }
 0x426   : > { %v761_v5 = vcombine.low %v736_v1, %v744_v2  ;;  %v777_v6 = vcombine.low %v752_v3, %v760_v4  ;;  %v762_v8 = vcombine.high %v736_v1, %v744_v2  ;;  %v778_v9 = vcombine.high %v752_v3, %v760_v4 }
 0x428   : > { %v769_v15 = vrot.slane %v761_v5, %v2132_v32  ;;  %v785_v16 = vrot.slane %v777_v6, %v2132_v32  ;;  %v776_v17 = vrot.slane %v762_v8, %v2132_v32  ;;  %v792_v18 = vrot.slane %v778_v9, %v2132_v32  ;;  %v1753_v6 = vld [vmem:[#allocation7] sm:$0xff]  }
 0x42a   : > { %v793_v19 = vcombine.low %v769_v15, %v785_v16  ;;  %v794_v20 = vcombine.high %v769_v15, %v785_v16  ;;  %v795_v21 = vcombine.low %v776_v17, %v792_v18  ;;  %v796_v22 = vcombine.high %v776_v17, %v792_v18 }
 0x42c   : > { %v797_v23 = vpack.c.bf16 %v793_v19, %v793_v19  ;;  %v798_v24 = vpack.c.bf16 %v794_v20, %v794_v20  ;;  %v799_v31 = vpack.c.bf16 %v795_v21, %v795_v21  ;;  %v800_v33 = vpack.c.bf16 %v796_v22, %v796_v22 }
 0x42e   : > { %v1039_v30 = vsel %vm1037_vm3, %v797_v23, 0  ;;  %v1085_v7 = vsel %vm1037_vm3, %v798_v24, 0  ;;  %v1131_v27 = vsel %vm1037_vm3, %v799_v31, 0  ;;  %v1177_v28 = vsel %vm1037_vm3, %v800_v33, 0 }
 0x42f   : > { %1638 = vmatpush3.bf16.msra.mxu1 %v1039_v30  ;;  %1644 = vmatpush3.bf16.msra.mxu0 %v1085_v7 }
 0x430   : > { %1649 = vmatprep.subr.bf16.mxu1 %v1925_v0  ;;  %1655 = vmatprep.subr.bf16.mxu0 %v1925_v0 }
 0x432   : > { %1640 = vmatmul.mubr.msk.bf16.vlgmr.msra.gmra.mxu1 %vm801_vm2, %v1030_v34  ;;  %1646 = vmatmul.mubr.msk.bf16.vlgmr.msra.gmra.mxu0 %vm801_vm2, %v1031_v35 }
 0x433   : > { %1650 = vmatpush3.bf16.msra.mxu1 %v1131_v27  ;;  %1656 = vmatpush3.bf16.msra.mxu0 %v1177_v28 }
 0x434   : > { %1651 = vmatprep.mubr.msk.bf16.mxu1 %vm1926_vm0, %v1925_v0  ;;  %1657 = vmatprep.mubr.msk.bf16.mxu0 %vm1926_vm0, %v1925_v0 }
 0x435   : > { %1661 = vmatprep.subr.bf16.mxu1 %v1925_v0 }
 0x447   : > { %v1018_v36 = vpop.xlane.xlu0 %1017 }
 0x448   : > { %1766 = vrcp.f32 %v1018_v36 }
 0x44a   : > { %v1021_v39 = vpop.xlane.xlu1 %1020 }
 0x44b   : > { %1768 = vrcp.f32 %v1021_v39 }
 0x455   : > { %v1767_v12 = vpop.eup %1766 }
 0x456   : > { %v1028_v11 = vmul.f32 %v1767_v12, %v2202_v37 }
 0x458   : > { %v1769_v13 = vpop.eup %1768  ;;  %v1032_v40 = vpack.c.bf16 %v1028_v11, %v1028_v11 }
 0x459   : > { %v1029_v41 = vmul.f32 %v1769_v13, %v2204_v38 }
 0x45a   : > { %1652 = vmatmul.mubr.msk.bf16.vlgmr.msra.gmra.mxu1 %vm801_vm2, %v1032_v40  ;;  %v1575_v40 = vld [vmem:[%s2323_s4] ss:$0 sm:$0xff] }
 0x45b   : > { %v1033_v42 = vpack.c.bf16 %v1029_v41, %v1029_v41  ;;  %1665 = vmatprep.mubr.msk.bf16.mxu1 %vm1926_vm0, %v1925_v0  ;;  %1662 = vmatpush3.bf16.msra.mxu1 %v1752_v43 }
 0x45c   : > { %1663 = vmatprep.subr.bf16.mxu1 %v1925_v0 }
 0x45d   : > { %1658 = vmatmul.mubr.msk.bf16.vlgmr.msra.gmra.mxu0 %vm801_vm2, %v1033_v42 }
 0x45f   : > { %1664 = vmatpush3.bf16.msra.mxu1 %v1753_v6 }
 0x4f2   : > { %v1075_v44 = vpop.f32.mrf.mxu1  ;;  %v1121_v45 = vpop.f32.mrf.mxu0 }
 0x4f4   : > { %v1641_v46 = vpop.f32.mrf.mxu1  ;;  %v1647_v37 = vpop.f32.mrf.mxu0 }
 0x4f6   : > { %v1078_v47 = vpop.f32.mrf.mxu1  ;;  %v1124_v48 = vpop.f32.mrf.mxu0 }
 0x4f8   : > { %v1642_v49 = vpop.f32.mrf.mxu1  ;;  %v1648_v38 = vpop.f32.mrf.mxu0 }
 0x51a   : > { %v1167_v50 = vpop.f32.mrf.mxu1 }
 0x51b   : > { %v1219_v51 = vcombine.low %v1075_v44, %v1167_v50  ;;  %v1220_v52 = vcombine.high %v1075_v44, %v1167_v50 }
 0x51c   : > { %v1653_v53 = vpop.f32.mrf.mxu1 }
 0x51d   : > { %v1213_v54 = vpop.f32.mrf.mxu0  ;;  %v1227_v59 = vrot.slane %v1219_v51, %v2130_v25  ;;  %v1234_v0 = vrot.slane %v1220_v52, %v2130_v25 }
 0x51e   : > { %v1170_v55 = vpop.f32.mrf.mxu1  ;;  %v1235_v56 = vcombine.low %v1121_v45, %v1213_v54  ;;  %v1236_v57 = vcombine.high %v1121_v45, %v1213_v54 }
 0x51f   : > { %v1659_v58 = vpop.f32.mrf.mxu0 }
 0x520   : > { %v1243_v60 = vrot.slane %v1235_v56, %v2130_v25  ;;  %v1250_v61 = vrot.slane %v1236_v57, %v2130_v25  ;;  %v1654_v62 = vpop.f32.mrf.mxu1 }
 0x521   : > { %v1216_v63 = vpop.f32.mrf.mxu0 }
 0x522   : > { %v1251_v1 = vcombine.low %v1227_v59, %v1243_v60  ;;  %v1252_v2 = vcombine.high %v1227_v59, %v1243_v60  ;;  %v1267_v3 = vcombine.low %v1234_v0, %v1250_v61  ;;  %v1268_v4 = vcombine.high %v1234_v0, %v1250_v61 }
 0x523   : > { %v1660_v5 = vpop.f32.mrf.mxu0 }
 0x524   : > { %v1259_v8 = vrot.slane %v1251_v1, %v2132_v32  ;;  %v1266_v9 = vrot.slane %v1252_v2, %v2132_v32  ;;  %v1275_v10 = vrot.slane %v1267_v3, %v2132_v32  ;;  %v1282_v14 = vrot.slane %v1268_v4, %v2132_v32 }
 0x526   : > { %v1287_v15 = vcombine.low %v1259_v8, %v1266_v9  ;;  %v1573_v16 = vcombine.high %v1259_v8, %v1266_v9  ;;  %v1303_v17 = vcombine.low %v1275_v10, %v1282_v14  ;;  %v1574_v18 = vcombine.high %v1275_v10, %v1282_v14 }
 0x528   : > { %v1294_v19 = vrot.slane %v1287_v15, %v2130_v25  ;;  %v1302_v20 = vrot.slane %v1573_v16, %v2130_v25  ;;  %v1310_v21 = vrot.slane %v1303_v17, %v2130_v25  ;;  %v1318_v22 = vrot.slane %v1574_v18, %v2130_v25 }
 0x52a   : > { %v1320_v23 = vcombine.high %v1294_v19, %v1302_v20  ;;  %v1336_v24 = vcombine.high %v1310_v21, %v1318_v22  ;;  %v1319_v26 = vcombine.low %v1294_v19, %v1302_v20  ;;  %v1335_v29 = vcombine.low %v1310_v21, %v1318_v22 }
 0x52c   : > { %v1334_v30 = vrot.slane %v1320_v23, %v2132_v32  ;;  %v1350_v7 = vrot.slane %v1336_v24, %v2132_v32  ;;  %v1327_v31 = vrot.slane %v1319_v26, %v2132_v32  ;;  %v1343_v33 = vrot.slane %v1335_v29, %v2132_v32 }
 0x52e   : > { %v1353_v34 = vcombine.low %v1334_v30, %v1350_v7  ;;  %v1352_v35 = vcombine.high %v1327_v31, %v1343_v33  ;;  %v1351_v27 = vcombine.low %v1327_v31, %v1343_v33  ;;  %v1354_v25 = vcombine.high %v1334_v30, %v1350_v7 }
 0x530   : > { %1360 = vrot.lane.b32.xlu1 %v1353_v34, %s1934_s29  ;;  %1356 = vrot.lane.b32.xlu0 %v1352_v35, %s1935_s6 }
 0x534   : > { %1364 = vrot.lane.b32.xlu0 %v1354_v25, %s1936_s28 }
 0x5a2   : > { %v1357_v28 = vpop.permute.xlu0 %1356  ;;  %v1361_v36 = vpop.permute.xlu1 %1360 }
 0x5a3   : > { %v1367_v39 = vsel %vm801_vm2, %v1351_v27, %v1357_v28 }
 0x5a4   : > { %v1369_v32 = vsel %vm1368_vm4, %v1367_v39, %v1361_v36 }
 0x5a6   : > { %v1365_v12 = vpop.permute.xlu0 %1364 }
 0x5a7   : > { %v1371_v11 = vsel %vm1370_vm5, %v1369_v32, %v1365_v12 }
 0x5a8   : > { %v1372_v13 = vpack.c.bf16 %v1371_v11, %v1371_v11 }
 0x5aa   : > { %1666 = vmatmul.mubr.msk.bf16.vlgmr.msra.gmra.mxu1 %vm295_vm1, %v1372_v13 }
 0x66a   : > { %v1433_v41 = vpop.f32.mrf.mxu1 }
 0x66b   : > { %v1434_v42 = vadd.f32 %v1575_v40, %v1433_v41 }
 0x66c   : > { %v1667_v43 = vpop.f32.mrf.mxu1 }
 0x66d   : > { %1439 = vst.msk [vmem:[%s268_s17] sm:$0xff] %vm295_vm1, %v1434_v42 }
 0x66e   : > { %v1436_v44 = vpop.f32.mrf.mxu1 }
 0x66f   : > { %1863 = shalt.err (!%p1860_p9)
}
 0x670   : > { %s1864_s29 = scalar_lea.hbm %s2275_s10, 128  ;;  %s1868_s28 = scalar_lea.hbm %s2324_s5, 256 }
 0x671   : > { %p1865_p13 = scmp.ne.s32.totalorder %s2275_s10, %s1864_s29  ;;  %p1869_p4 = scmp.lt.s32.totalorder %s2275_s10, %s2324_s5 }
 0x672   : > { %p1870_p8 = scmp.lt.s32.totalorder %s1868_s28, %s1864_s29 }
 0x673   : > { %p1866_p5 = pnand %p1865_p13, %p2340_p0 }
 0x674   : > { %p1871_p3 = por %p1870_p8, %p1869_p4 }
 0x675   : > { %p1867_p10 = pneg %p1866_p5 }
 0x677   : > { %p1872_p11 = pnand %p1871_p3, %p1867_p10 }
 0x679   : > { %1875 = shalt.err (!%p1872_p11)
}
 0x67a   : > { %1679 = dma.vmem_to_hbm [thread:$0]  (%p2340_p0), %s2277_s24, 128, %s2275_s10, %s1441_s22   ;;  %v1668_v45 = vpop.f32.mrf.mxu1 }
 0x67b PF: > { %s1466_s16 = sand.u32 1, %s1906_s18   ;;  %p2341_p1 = scmp.ne.s32.totalorder %s2330_s25, 0 }
 0x67c   : > { %p2342_p2 = scmp.ge.s32.totalorder %s1918_s21, 2  ;;  %s1467_s17 = scalar_lea.sflag [#allocation4], %s1466_s16 }
 0x67e   : > { %p1693_p6 = pnand %p2342_p2, %p2341_p1 }
 0x680   : > { %p1694_p12 = pneg %p1693_p6 }
 0x682   : > { %1901 = dma.done.wait (%p1694_p12), %s1467_s17, 128  }
 0x683   : > { %1903 = vsyncadd (%p1694_p12), %s1467_s17, 4294967168  ;;  %p19_p7 = scmp.ge.s32.totalorder %s2040_s15, 4   ;;  %s2343_s18 = smov %s1910_s19 }
 0x684   : > { %s2344_s19 = smov %s1914_s20  ;;  %s2345_s20 = smov %s2056_s27 }
 0x685   : > { %s2346_s21 = smov %s2040_s15  ;;  %21 = sbr.rel (!%p19_p7) target bundleno = 6 (0x6), region = 93 }
 0x68a   :  { %1472 = vsyncpa [#allocation3], 1 }
 0x68b   :  { %1474 = vsyncpa [#allocation3 + $0x1], 1 }
 0x68c   :  { %1475 = vsyncpa [#allocation6], 1 }
 0x68d   :  { %1476 = vsyncpa [#allocation4], 1 }
 0x68e   :  { %1478 = vsyncpa [#allocation4 + $0x1], 1 }

</bundles_post_ra>
